<compile_context>
chip_gen: v7x
topology: tpu7x:2x2x1
jax: 0.10.0
libtpu: 0.0.40
codegen_flags: <defaults>
</compile_context>

<pallas_src>
import jax
import jax.numpy as jnp
from jax.experimental import pallas as pl
from jax.experimental.pallas import tpu as pltpu

IN_DIM = 32
MEM_DIM = 32
NUM_LEAVES = 8
TREES_PER_TILE = 16   # trees per grid step; multiple of 8 keeps sublane slices aligned


def _bit_reversal_perm(n):
    """Slab position p of each tree holds original leaf bit_reverse(p)."""
    bits = max(n.bit_length() - 1, 1)
    return [int(f"{p:0{bits}b}"[::-1], 2) for p in range(n)]


# ---------------------------------------------------------------------------
# Fused whole-tree kernel (one grid step = TB trees).
#
#   leaf:     g = x @ [wc|wo] + [bc|bo];  c = g[:, :M];  h = sigmoid(g[:, M:]) * tanh(c)
#   composer: gates = [lh|rh] @ [[wl],[wr]] + b   (gate order [i|lf|rf|u])
#             c = sig(i)*tanh(u) + sig(lf)*lc + sig(rf)*rc ;  h = tanh(c)
#
# Row layout inside a tile: row = p*TB + t, where p is the bit-reversed node
# position and t the tree index within the tile.  At every level the left
# children are rows [0, q) and the right children rows [q, 2q), so the next
# level's (q, 2M) matmul LHS is a plain lane-axis concat of two contiguous
# sublane slices — no VMEM stash, no strided gathers, c/h stay in registers.
# ---------------------------------------------------------------------------
def _tree_kernel(x_ref, wleaf_ref, bleaf_ref, wcomp_ref, bcomp_ref, out_ref):
    M = MEM_DIM
    rows = x_ref.shape[0]            # NUM_LEAVES * TB
    tb = rows // NUM_LEAVES          # trees in this tile

    # ---- leaf level: all leaves of all trees in one (rows, IN_DIM)x(IN_DIM, 2M) matmul
    g = jnp.dot(x_ref[...], wleaf_ref[...], preferred_element_type=jnp.float32)
    g = g + bleaf_ref[...]
    c = g[:, 0:M]
    # NOTE: jax.nn.sigmoid lowers to the EUP logistic op (verified via the
    # previous clean run); keep it rather than an approx-reciprocal rewrite so
    # the 1e-5 reference match holds.
    h = jax.nn.sigmoid(g[:, M:2 * M]) * jnp.tanh(c)

    wcomp = wcomp_ref[...]
    # Hoist the composer-bias broadcast out of the unrolled level loop and
    # slice rows per level (broadcast_in_dim is not CSE'd across iterations).
    bcomp_wide = jnp.broadcast_to(bcomp_ref[...], (rows // 2, 4 * M))

    # ---- composer levels, fully unrolled (static Python loop); state in vregs
    n = rows
    while n > tb:
        q = n // 2
        lrh = jnp.concatenate([h[:q], h[q:n]], axis=1)       # (q, 2M) = [lh | rh]
        lc = c[:q]
        rc = c[q:n]
        gates = jnp.dot(lrh, wcomp, preferred_element_type=jnp.float32)
        gates = gates + bcomp_wide[:q]
        sig = jax.nn.sigmoid(gates[:, 0:3 * M])               # [i | lf | rf]
        u = jnp.tanh(gates[:, 3 * M:4 * M])
        c = sig[:, 0:M] * u + sig[:, M:2 * M] * lc + sig[:, 2 * M:3 * M] * rc
        h = jnp.tanh(c)
        n = q

    # One contiguous [c | h] store per tile (row t = tree t of this tile).
    out_ref[...] = jnp.concatenate([c, h], axis=1)


def fused_tree_forward(embs, leaf_p, comp_p):
    """embs: (B, NUM_LEAVES, IN_DIM) natural leaf order -> (root_c, root_h), each (B, M)."""
    B, L, D = embs.shape
    assert L == NUM_LEAVES and D == IN_DIM
    assert L & (L - 1) == 0, "fused kernel requires a complete power-of-2 tree"

    tb = TREES_PER_TILE
    Bp = ((B + tb - 1) // tb) * tb
    if Bp != B:                      # pad batch to a whole number of tiles
        embs = jnp.pad(embs, ((0, Bp - B), (0, 0), (0, 0)))

    # Bit-reversed, position-major / tree-minor row layout per batch tile:
    #   global row = tile*L*tb + p*tb + t  holds  embs[tile*tb + t, bitrev(p)].
    # TODO(synk): in a full pipeline this reorder belongs in the upstream
    # embedding-lookup indices instead of a per-forward gather/transpose.
    perm = _bit_reversal_perm(L)
    x = embs[:, perm, :]
    x = x.reshape(Bp // tb, tb, L, D).transpose(0, 2, 1, 3).reshape(Bp * L, D)

    out = pl.pallas_call(
        _tree_kernel,
        out_shape=jax.ShapeDtypeStruct((Bp, 2 * MEM_DIM), jnp.float32),
        grid_spec=pltpu.PrefetchScalarGridSpec(
            num_scalar_prefetch=0,
            grid=(Bp // tb,),
            in_specs=[
                pl.BlockSpec((L * tb, D), lambda i: (i, 0)),              # embeddings tile
                pl.BlockSpec((IN_DIM, 2 * MEM_DIM), lambda i: (0, 0)),    # leaf W (resident)
                pl.BlockSpec((1, 2 * MEM_DIM), lambda i: (0, 0)),         # leaf b
                pl.BlockSpec((2 * MEM_DIM, 4 * MEM_DIM), lambda i: (0, 0)),  # comp W
                pl.BlockSpec((1, 4 * MEM_DIM), lambda i: (0, 0)),         # comp b
            ],
            out_specs=pl.BlockSpec((tb, 2 * MEM_DIM), lambda i: (i, 0)),
        ),
        compiler_params=pltpu.CompilerParams(
            dimension_semantics=("parallel",)),   # megacore split on v7x
    )(x, leaf_p["w"], leaf_p["b"], comp_p["w"], comp_p["b"])

    return out[:B, :MEM_DIM], out[:B, MEM_DIM:]


# ---------------------------------------------------------------------------
# Parameter init (deterministic, synthetic) — fused layouts.
#   leaf: w (IN_DIM, 2M) = [wc | wo], b (1, 2M) = [bc | bo]
#   comp: w (2M, 4M)     = [[wl_i|wl_lf|wl_rf|wl_u], [wr_i|wr_lf|wr_rf|wr_u]]
#         b (1, 4M)      = bl + br
# ---------------------------------------------------------------------------
def init_params(key):
    ks = jax.random.split(key, 22)

    def lin(kw, kb, din, dout):
        scale = 1.0 / jnp.sqrt(din)
        w = jax.random.uniform(kw, (din, dout), jnp.float32, -scale, scale)
        b = jax.random.uniform(kb, (1, dout), jnp.float32, -scale, scale)
        return w, b

    wc, bc = lin(ks[0], ks[1], IN_DIM, MEM_DIM)
    wo, bo = lin(ks[2], ks[3], IN_DIM, MEM_DIM)
    leaf = dict(w=jnp.concatenate([wc, wo], axis=1),
                b=jnp.concatenate([bc, bo], axis=1))

    wls, wrs, bls, brs = [], [], [], []
    k = 4
    for _ in range(4):  # i, lf, rf, u
        wl, bl = lin(ks[k], ks[k + 1], MEM_DIM, MEM_DIM); k += 2
        wr, br = lin(ks[k], ks[k + 1], MEM_DIM, MEM_DIM); k += 2
        wls.append(wl); wrs.append(wr); bls.append(bl); brs.append(br)
    comp = dict(
        w=jnp.concatenate([jnp.concatenate(wls, axis=1),
                           jnp.concatenate(wrs, axis=1)], axis=0),      # (2M, 4M)
        b=jnp.concatenate(bls, axis=1) + jnp.concatenate(brs, axis=1),  # (1, 4M)
    )
    return leaf, comp


# ---------------------------------------------------------------------------
# Tree structure (matches PyTorch module usage)
# ---------------------------------------------------------------------------
class Tree:
    def __init__(self, idx=None, children=None):
        self.idx = idx
        self.children = children if children is not None else []
        self.num_children = len(self.children)
        self.parent = None
        self.state = None
        for ch in self.children:
            ch.parent = self


def build_complete_tree(num_leaves):
    nodes = [Tree(idx=i + 1) for i in range(num_leaves)]
    while len(nodes) > 1:
        nxt = []
        for i in range(0, len(nodes), 2):
            nxt.append(Tree(children=[nodes[i], nodes[i + 1]]))
        nodes = nxt
    return nodes[0]


def _count_leaves(tree):
    if tree.num_children == 0:
        return 1
    return sum(_count_leaves(ch) for ch in tree.children)


class BinaryTreeLSTMPallas:
    def __init__(self, leaf_params, comp_params):
        self.leaf_params = leaf_params
        self.comp_params = comp_params
        self.root_c = None
        self.root_h = None
        self._fwd = jax.jit(fused_tree_forward)

    def forward_batch(self, embs):
        """embs: (B, NUM_LEAVES, IN_DIM) -> (root_c, root_h), each (B, MEM_DIM)."""
        self.root_c, self.root_h = self._fwd(embs, self.leaf_params, self.comp_params)
        return self.root_c, self.root_h

    def forward(self, tree, embs):
        """Single-tree API matching the PyTorch module: embs (NUM_LEAVES, IN_DIM)."""
        # TODO(synk): arbitrary (non-complete) tree topologies are data-dependent
        # control flow and would need host recursion / a level schedule; the fused
        # kernel covers the complete power-of-2 tree built by build_complete_tree.
        assert _count_leaves(tree) == embs.shape[0]
        c, h = self._fwd(embs[None], self.leaf_params, self.comp_params)
        self.root_c, self.root_h = c, h
        return c, h


# ---------------------------------------------------------------------------
# Pure-JAX reference (recursive, natural tree order, batched over trees)
# ---------------------------------------------------------------------------
def ref_leaf(x, p):
    g = x @ p["w"] + p["b"]
    c = g[:, :MEM_DIM]
    o = jax.nn.sigmoid(g[:, MEM_DIM:])
    return c, o * jnp.tanh(c)


def ref_composer(lc, lh, rc, rh, p):
    g = jnp.concatenate([lh, rh], axis=-1) @ p["w"] + p["b"]
    M = MEM_DIM
    i = jax.nn.sigmoid(g[:, 0:M])
    lf = jax.nn.sigmoid(g[:, M:2 * M])
    rf = jax.nn.sigmoid(g[:, 2 * M:3 * M])
    u = jnp.tanh(g[:, 3 * M:4 * M])
    c = i * u + lf * lc + rf * rc
    return c, jnp.tanh(c)


def ref_forward(tree, embs, leaf_p, comp_p):
    """embs: (B, NUM_LEAVES, IN_DIM) -> root (c, h), each (B, MEM_DIM)."""
    if tree.num_children == 0:
        return ref_leaf(embs[:, tree.idx - 1, :], leaf_p)
    lc, lh = ref_forward(tree.children[0], embs, leaf_p, comp_p)
    rc, rh = ref_forward(tree.children[1], embs, leaf_p, comp_p)
    return ref_composer(lc, lh, rc, rh, comp_p)


if __name__ == "__main__":
    key = jax.random.PRNGKey(0)
    kp, ke = jax.random.split(key)
    leaf_params, comp_params = init_params(kp)

    B = 64  # small demo batch: grid=(4,) tiles of 16 trees
    embs = jax.random.normal(ke, (B, NUM_LEAVES, IN_DIM), jnp.float32)

    model = BinaryTreeLSTMPallas(leaf_params, comp_params)

    # Batched forward: all B trees in one pallas_call (parallel batch grid axis).
    root_c, root_h = model.forward_batch(embs)
    root_c, root_h = jax.block_until_ready((root_c, root_h))

    # Single-tree forward matching the original module's API.
    tree = build_complete_tree(NUM_LEAVES)
    c1, h1 = model.forward(tree, embs[0])
    c1, h1 = jax.block_until_ready((c1, h1))

    # Correctness vs. the recursive pure-JAX reference.
    ref_c, ref_h = ref_forward(build_complete_tree(NUM_LEAVES), embs,
                               leaf_params, comp_params)
    assert root_c.shape == (B, MEM_DIM) and root_h.shape == (B, MEM_DIM)
    assert jnp.allclose(root_c, ref_c, atol=1e-5, rtol=1e-5)
    assert jnp.allclose(root_h, ref_h, atol=1e-5, rtol=1e-5)
    assert jnp.allclose(c1, ref_c[0:1], atol=1e-5, rtol=1e-5)
    assert jnp.allclose(h1, ref_h[0:1], atol=1e-5, rtol=1e-5)
    print("KERNEL_OK")
</pallas_src>

<mosaic_0001>
module attributes {stable_mosaic.version = 11 : i64} {
  func.func @_tree_kernel(%arg0: i32, %arg1: memref<128x32xf32, #tpu.memory_space<vmem>>, %arg2: memref<32x64xf32, #tpu.memory_space<vmem>>, %arg3: memref<1x64xf32, #tpu.memory_space<vmem>>, %arg4: memref<64x128xf32, #tpu.memory_space<vmem>>, %arg5: memref<1x128xf32, #tpu.memory_space<vmem>>, %arg6: memref<16x64xf32, #tpu.memory_space<vmem>>) attributes {dimension_semantics = [#tpu.dimension_semantics<parallel>], iteration_bounds = array<i64: 4>, scalar_prefetch = 0 : i64, scratch_operands = 0 : i64, tpu.core_type = #tpu.core_type<tc>, window_params = [{transform_indices = @transform_0, window_bounds = array<i64: 128, 32>}, {pipeline_mode = #tpu.pipeline_mode<synchronous>, transform_indices = @transform_1, window_bounds = array<i64: 32, 64>}, {pipeline_mode = #tpu.pipeline_mode<synchronous>, transform_indices = @transform_2, window_bounds = array<i64: 1, 64>}, {pipeline_mode = #tpu.pipeline_mode<synchronous>, transform_indices = @transform_3, window_bounds = array<i64: 64, 128>}, {pipeline_mode = #tpu.pipeline_mode<synchronous>, transform_indices = @transform_4, window_bounds = array<i64: 1, 128>}, {transform_indices = @transform_5, window_bounds = array<i64: 16, 64>}]} {
    %c0 = arith.constant 0 : index
    %c0_0 = arith.constant 0 : index
    %0 = vector.load %arg1[%c0, %c0_0] : memref<128x32xf32, #tpu.memory_space<vmem>>, vector<128x32xf32>
    %c0_1 = arith.constant 0 : index
    %c0_2 = arith.constant 0 : index
    %1 = vector.load %arg2[%c0_1, %c0_2] : memref<32x64xf32, #tpu.memory_space<vmem>>, vector<32x64xf32>
    %cst = arith.constant dense<0.000000e+00> : vector<128x64xf32>
    %2 = tpu.matmul %0, %1, %cst {dimension_numbers = #tpu.dot_dimension_numbers<[1], [0], [0], [1], [0, 0, 1, 1], [], []>} : vector<128x32xf32>, vector<32x64xf32>, vector<128x64xf32> -> vector<128x64xf32>
    %c0_3 = arith.constant 0 : index
    %c0_4 = arith.constant 0 : index
    %3 = vector.load %arg3[%c0_3, %c0_4] : memref<1x64xf32, #tpu.memory_space<vmem>>, vector<1x64xf32>
    %4 = vector.broadcast %3 : vector<1x64xf32> to vector<128x64xf32>
    %5 = arith.addf %2, %4 : vector<128x64xf32>
    %6 = vector.extract_strided_slice %5 {offsets = [0, 0], sizes = [128, 32], strides = [1, 1]} : vector<128x64xf32> to vector<128x32xf32>
    %7 = vector.extract_strided_slice %5 {offsets = [0, 32], sizes = [128, 32], strides = [1, 1]} : vector<128x64xf32> to vector<128x32xf32>
    %8 = arith.negf %7 : vector<128x32xf32>
    %9 = math.exp %8 : vector<128x32xf32>
    %cst_5 = arith.constant 1.000000e+00 : f32
    %10 = vector.broadcast %cst_5 : f32 to vector<128x32xf32>
    %11 = arith.addf %10, %9 : vector<128x32xf32>
    %12 = arith.divf %10, %11 : vector<128x32xf32>
    %13 = math.tanh %6 : vector<128x32xf32>
    %14 = arith.mulf %12, %13 : vector<128x32xf32>
    %c0_6 = arith.constant 0 : index
    %c0_7 = arith.constant 0 : index
    %15 = vector.load %arg4[%c0_6, %c0_7] : memref<64x128xf32, #tpu.memory_space<vmem>>, vector<64x128xf32>
    %c0_8 = arith.constant 0 : index
    %c0_9 = arith.constant 0 : index
    %16 = vector.load %arg5[%c0_8, %c0_9] : memref<1x128xf32, #tpu.memory_space<vmem>>, vector<1x128xf32>
    %17 = vector.shape_cast %16 : vector<1x128xf32> to vector<1x128xf32>
    %18 = vector.broadcast %17 : vector<1x128xf32> to vector<64x128xf32>
    %19 = vector.extract_strided_slice %14 {offsets = [0, 0], sizes = [64, 32], strides = [1, 1]} : vector<128x32xf32> to vector<64x32xf32>
    %20 = vector.extract_strided_slice %14 {offsets = [64, 0], sizes = [64, 32], strides = [1, 1]} : vector<128x32xf32> to vector<64x32xf32>
    %21 = tpu.concatenate %19, %20 in 1 : vector<64x32xf32>, vector<64x32xf32> -> vector<64x64xf32>
    %22 = vector.extract_strided_slice %6 {offsets = [0, 0], sizes = [64, 32], strides = [1, 1]} : vector<128x32xf32> to vector<64x32xf32>
    %23 = vector.extract_strided_slice %6 {offsets = [64, 0], sizes = [64, 32], strides = [1, 1]} : vector<128x32xf32> to vector<64x32xf32>
    %cst_10 = arith.constant dense<0.000000e+00> : vector<64x128xf32>
    %24 = tpu.matmul %21, %15, %cst_10 {dimension_numbers = #tpu.dot_dimension_numbers<[1], [0], [0], [1], [0, 0, 1, 1], [], []>} : vector<64x64xf32>, vector<64x128xf32>, vector<64x128xf32> -> vector<64x128xf32>
    %25 = arith.addf %24, %18 : vector<64x128xf32>
    %26 = vector.extract_strided_slice %25 {offsets = [0, 0], sizes = [64, 96], strides = [1, 1]} : vector<64x128xf32> to vector<64x96xf32>
    %27 = arith.negf %26 : vector<64x96xf32>
    %28 = math.exp %27 : vector<64x96xf32>
    %cst_11 = arith.constant 1.000000e+00 : f32
    %29 = vector.broadcast %cst_11 : f32 to vector<64x96xf32>
    %30 = arith.addf %29, %28 : vector<64x96xf32>
    %31 = arith.divf %29, %30 : vector<64x96xf32>
    %32 = vector.extract_strided_slice %25 {offsets = [0, 96], sizes = [64, 32], strides = [1, 1]} : vector<64x128xf32> to vector<64x32xf32>
    %33 = math.tanh %32 : vector<64x32xf32>
    %34 = vector.extract_strided_slice %31 {offsets = [0, 0], sizes = [64, 32], strides = [1, 1]} : vector<64x96xf32> to vector<64x32xf32>
    %35 = arith.mulf %34, %33 : vector<64x32xf32>
    %36 = vector.extract_strided_slice %31 {offsets = [0, 32], sizes = [64, 32], strides = [1, 1]} : vector<64x96xf32> to vector<64x32xf32>
    %37 = arith.mulf %36, %22 : vector<64x32xf32>
    %38 = arith.addf %35, %37 : vector<64x32xf32>
    %39 = vector.extract_strided_slice %31 {offsets = [0, 64], sizes = [64, 32], strides = [1, 1]} : vector<64x96xf32> to vector<64x32xf32>
    %40 = arith.mulf %39, %23 : vector<64x32xf32>
    %41 = arith.addf %38, %40 : vector<64x32xf32>
    %42 = math.tanh %41 : vector<64x32xf32>
    %43 = vector.extract_strided_slice %42 {offsets = [0, 0], sizes = [32, 32], strides = [1, 1]} : vector<64x32xf32> to vector<32x32xf32>
    %44 = vector.extract_strided_slice %42 {offsets = [32, 0], sizes = [32, 32], strides = [1, 1]} : vector<64x32xf32> to vector<32x32xf32>
    %45 = tpu.concatenate %43, %44 in 1 : vector<32x32xf32>, vector<32x32xf32> -> vector<32x64xf32>
    %46 = vector.extract_strided_slice %41 {offsets = [0, 0], sizes = [32, 32], strides = [1, 1]} : vector<64x32xf32> to vector<32x32xf32>
    %47 = vector.extract_strided_slice %41 {offsets = [32, 0], sizes = [32, 32], strides = [1, 1]} : vector<64x32xf32> to vector<32x32xf32>
    %cst_12 = arith.constant dense<0.000000e+00> : vector<32x128xf32>
    %48 = tpu.matmul %45, %15, %cst_12 {dimension_numbers = #tpu.dot_dimension_numbers<[1], [0], [0], [1], [0, 0, 1, 1], [], []>} : vector<32x64xf32>, vector<64x128xf32>, vector<32x128xf32> -> vector<32x128xf32>
    %49 = vector.extract_strided_slice %18 {offsets = [0, 0], sizes = [32, 128], strides = [1, 1]} : vector<64x128xf32> to vector<32x128xf32>
    %50 = arith.addf %48, %49 : vector<32x128xf32>
    %51 = vector.extract_strided_slice %50 {offsets = [0, 0], sizes = [32, 96], strides = [1, 1]} : vector<32x128xf32> to vector<32x96xf32>
    %52 = arith.negf %51 : vector<32x96xf32>
    %53 = math.exp %52 : vector<32x96xf32>
    %cst_13 = arith.constant 1.000000e+00 : f32
    %54 = vector.broadcast %cst_13 : f32 to vector<32x96xf32>
    %55 = arith.addf %54, %53 : vector<32x96xf32>
    %56 = arith.divf %54, %55 : vector<32x96xf32>
    %57 = vector.extract_strided_slice %50 {offsets = [0, 96], sizes = [32, 32], strides = [1, 1]} : vector<32x128xf32> to vector<32x32xf32>
    %58 = math.tanh %57 : vector<32x32xf32>
    %59 = vector.extract_strided_slice %56 {offsets = [0, 0], sizes = [32, 32], strides = [1, 1]} : vector<32x96xf32> to vector<32x32xf32>
    %60 = arith.mulf %59, %58 : vector<32x32xf32>
    %61 = vector.extract_strided_slice %56 {offsets = [0, 32], sizes = [32, 32], strides = [1, 1]} : vector<32x96xf32> to vector<32x32xf32>
    %62 = arith.mulf %61, %46 : vector<32x32xf32>
    %63 = arith.addf %60, %62 : vector<32x32xf32>
    %64 = vector.extract_strided_slice %56 {offsets = [0, 64], sizes = [32, 32], strides = [1, 1]} : vector<32x96xf32> to vector<32x32xf32>
    %65 = arith.mulf %64, %47 : vector<32x32xf32>
    %66 = arith.addf %63, %65 : vector<32x32xf32>
    %67 = math.tanh %66 : vector<32x32xf32>
    %68 = vector.extract_strided_slice %67 {offsets = [0, 0], sizes = [16, 32], strides = [1, 1]} : vector<32x32xf32> to vector<16x32xf32>
    %69 = vector.extract_strided_slice %67 {offsets = [16, 0], sizes = [16, 32], strides = [1, 1]} : vector<32x32xf32> to vector<16x32xf32>
    %70 = tpu.concatenate %68, %69 in 1 : vector<16x32xf32>, vector<16x32xf32> -> vector<16x64xf32>
    %71 = vector.extract_strided_slice %66 {offsets = [0, 0], sizes = [16, 32], strides = [1, 1]} : vector<32x32xf32> to vector<16x32xf32>
    %72 = vector.extract_strided_slice %66 {offsets = [16, 0], sizes = [16, 32], strides = [1, 1]} : vector<32x32xf32> to vector<16x32xf32>
    %cst_14 = arith.constant dense<0.000000e+00> : vector<16x128xf32>
    %73 = tpu.matmul %70, %15, %cst_14 {dimension_numbers = #tpu.dot_dimension_numbers<[1], [0], [0], [1], [0, 0, 1, 1], [], []>} : vector<16x64xf32>, vector<64x128xf32>, vector<16x128xf32> -> vector<16x128xf32>
    %74 = vector.extract_strided_slice %18 {offsets = [0, 0], sizes = [16, 128], strides = [1, 1]} : vector<64x128xf32> to vector<16x128xf32>
    %75 = arith.addf %73, %74 : vector<16x128xf32>
    %76 = vector.extract_strided_slice %75 {offsets = [0, 0], sizes = [16, 96], strides = [1, 1]} : vector<16x128xf32> to vector<16x96xf32>
    %77 = arith.negf %76 : vector<16x96xf32>
    %78 = math.exp %77 : vector<16x96xf32>
    %cst_15 = arith.constant 1.000000e+00 : f32
    %79 = vector.broadcast %cst_15 : f32 to vector<16x96xf32>
    %80 = arith.addf %79, %78 : vector<16x96xf32>
    %81 = arith.divf %79, %80 : vector<16x96xf32>
    %82 = vector.extract_strided_slice %75 {offsets = [0, 96], sizes = [16, 32], strides = [1, 1]} : vector<16x128xf32> to vector<16x32xf32>
    %83 = math.tanh %82 : vector<16x32xf32>
    %84 = vector.extract_strided_slice %81 {offsets = [0, 0], sizes = [16, 32], strides = [1, 1]} : vector<16x96xf32> to vector<16x32xf32>
    %85 = arith.mulf %84, %83 : vector<16x32xf32>
    %86 = vector.extract_strided_slice %81 {offsets = [0, 32], sizes = [16, 32], strides = [1, 1]} : vector<16x96xf32> to vector<16x32xf32>
    %87 = arith.mulf %86, %71 : vector<16x32xf32>
    %88 = arith.addf %85, %87 : vector<16x32xf32>
    %89 = vector.extract_strided_slice %81 {offsets = [0, 64], sizes = [16, 32], strides = [1, 1]} : vector<16x96xf32> to vector<16x32xf32>
    %90 = arith.mulf %89, %72 : vector<16x32xf32>
    %91 = arith.addf %88, %90 : vector<16x32xf32>
    %92 = math.tanh %91 : vector<16x32xf32>
    %93 = tpu.concatenate %91, %92 in 1 : vector<16x32xf32>, vector<16x32xf32> -> vector<16x64xf32>
    %c0_16 = arith.constant 0 : index
    %c0_17 = arith.constant 0 : index
    %94 = vector.load %arg6[%c0_16, %c0_17] : memref<16x64xf32, #tpu.memory_space<vmem>>, vector<16x64xf32>
    tpu.vector_store %arg6[%c0_16, %c0_17], %93 {strides = array<i32>} : memref<16x64xf32, #tpu.memory_space<vmem>>, vector<16x64xf32>,
    return
  }
  func.func @transform_0(%arg0: i32) -> (i32, i32) {
    %c0_i32 = arith.constant 0 : i32
    %c0_i32_0 = arith.constant 0 : i32
    return %arg0, %c0_i32 : i32, i32
  }
  func.func @transform_1(%arg0: i32) -> (i32, i32) {
    %c0_i32 = arith.constant 0 : i32
    %c0_i32_0 = arith.constant 0 : i32
    %c0_i32_1 = arith.constant 0 : i32
    return %c0_i32, %c0_i32_0 : i32, i32
  }
  func.func @transform_2(%arg0: i32) -> (i32, i32) {
    %c0_i32 = arith.constant 0 : i32
    %c0_i32_0 = arith.constant 0 : i32
    %c0_i32_1 = arith.constant 0 : i32
    return %c0_i32, %c0_i32_0 : i32, i32
  }
  func.func @transform_3(%arg0: i32) -> (i32, i32) {
    %c0_i32 = arith.constant 0 : i32
    %c0_i32_0 = arith.constant 0 : i32
    %c0_i32_1 = arith.constant 0 : i32
    return %c0_i32, %c0_i32_0 : i32, i32
  }
  func.func @transform_4(%arg0: i32) -> (i32, i32) {
    %c0_i32 = arith.constant 0 : i32
    %c0_i32_0 = arith.constant 0 : i32
    %c0_i32_1 = arith.constant 0 : i32
    return %c0_i32, %c0_i32_0 : i32, i32
  }
  func.func @transform_5(%arg0: i32) -> (i32, i32) {
    %c0_i32 = arith.constant 0 : i32
    %c0_i32_0 = arith.constant 0 : i32
    return %arg0, %c0_i32 : i32, i32
  }
}

</mosaic_0001>

<bundles_post_ra>
// kernel: fused_tree_forward.1
= control target key start
LH: loop header
LB: loop body
LE: loop exit
PB: predicated region body
PF: predicated region fallthrough
CT: control target
= control target key end

     0   :  { %s2112_s18 = smov 0   ;;  %s2544_s0 = inlined_call_operand.vmem [shape: f32[512,32], index: 0, kind: input, shape index: {}]   ;;  %s2545_s1 = inlined_call_operand.vmem [shape: f32[32,64], index: 1, kind: input, shape index: {}]   ;;  %s2546_s2 = inlined_call_operand.vmem [shape: f32[1,64], index: 2, kind: input, shape index: {}]   ;;  %s2547_s3 = inlined_call_operand.vmem [shape: f32[64,128], index: 3, kind: input, shape index: {}]   ;;  %s2548_s4 = inlined_call_operand.vmem [shape: f32[1,128], index: 4, kind: input, shape index: {}]   ;;  %s2549_s5 = inlined_call_operand.vmem [shape: f32[64,64], index: 5, kind: output, shape index: {}]  }
   0x1 LB: > { %s1564_s19 = sadd.s32 4294967295, %s2077_s18   ;;  %p1568_p0 = scmp.ge.s32.totalorder %s2077_s18, 1  ;;  %s2077_s18 = sphi %s2112_s18, %s15_s18  }
   0x2   : > { %p188_p1 = scmp.lt.s32.totalorder %s2077_s18, 5 }
   0x4   : > { %p189_p2 = pnand %p1568_p0, %p188_p1 }
   0x5   : > { %v244_v0 = vld [vmem:[%s2545_s1] sm:$0xff] (!%p189_p2)  ;;  %v245_v1 = vld [vmem:[%s2545_s1 + $0x8] sm:$0xff] (!%p189_p2)  ;;  %v246_v2 = vld [vmem:[%s2545_s1 + $0x10] sm:$0xff] (!%p189_p2)  ;;  %s1569_s26 = sshll.u32 (!%p189_p2), %s1564_s19, 4  ;;  %vm255_vm0 = vcmask (!%p189_p2), 261120   ;;  %s2079_s10 = smov (!%p189_p2), 32  }
   0x6   : > { %192 = sbr.rel (%p189_p2) target bundleno = 1983 (0x7bf), region = 40  ;;  %v1796_v3 = vpack.c.bf16 (!%p189_p2), %v245_v1, %v244_v0  ;;  %v247_v4 = vld [vmem:[%s2545_s1 + $0x18] sm:$0xff] (!%p189_p2)  ;;  %p217_p3 = scmp.lt.s32.totalorder (!%p189_p2), %s1569_s26, 63  ;;  %v2174_v22 = vld [vmem:[%s2546_s2] ss:$0 sm:$0xff] (!%p189_p2)  ;;  %vm696_vm1 = vcmask (!%p189_p2), 523264  }
   0x7   : > { %v1800_v5 = vpack.c.bf16 (!%p189_p2), %v247_v4, %v246_v2  ;;  %s2081_s30 = smov (!%p189_p2), 64   ;;  %s1571_s8 = sshll.u32 (!%p189_p2), %s1564_s19, 1 }
   0x8   : > { %1797 = vmatprep.subr.bf16.mxu0 (!%p189_p2), %v1796_v3  ;;  %p223_p4 = scmp.lt.s32.totalorder (!%p189_p2), %s1571_s8, 7 }
   0x9   : > { %1799 = vmatpush3.bf16.msra.mxu0 (!%p189_p2), %v1796_v3 }
   0xa   : > { %1801 = vmatprep.subr.bf16.mxu0 (!%p189_p2), %v1800_v5 }
   0xd   : > { %s2551_s26 = smov (!%p217_p3, %s1569_s26), 63  ;;  %1803 = vmatpush3.bf16.msra.mxu0 %v1800_v5  ;;  %s2553_s8 = smov (!%p223_p4, %s1571_s8), 7 }
   0xe   : > { %s1570_s29 = sshll.u32 %s2551_s26, 3  ;;  %s1572_s9 = sshll.u32 %s2553_s8, 3 }
   0xf   : > { %s2137_s7 = scalar_lea.vmem %s2544_s0, %s1570_s29  ;;  %s2080_s29 = smov 96  }
  0x10   : > { %v228_v6 = vld [vmem:[%s2137_s7] sm:$0xff]  ;;  %v229_v7 = vld [vmem:[%s2137_s7 + $0x8] sm:$0xff]  ;;  %v230_v8 = vld [vmem:[%s2137_s7 + $0x10] sm:$0xff]  ;;  %s226_s13 = scalar_lea.vmem %s2549_s5, %s1572_s9 }
  0x11   : > { %1703 = vmatprep.mubr.msk.f32.mxu0 %vm255_vm0, %v228_v6  ;;  %v231_v9 = vld [vmem:[%s2137_s7 + $0x18] sm:$0xff]  ;;  %v232_v10 = vld [vmem:[%s2137_s7 + $0x20] sm:$0xff]  ;;  %v233_v11 = vld [vmem:[%s2137_s7 + $0x28] sm:$0xff] }
  0x12   : > { %1704 = vmatmul.mubr.msk.f32.vlgmr.msra.gmra.mrb[0].mxu0 %vm255_vm0, %v229_v7  ;;  %v234_v12 = vld [vmem:[%s2137_s7 + $0x30] sm:$0xff]  ;;  %v235_v13 = vld [vmem:[%s2137_s7 + $0x38] sm:$0xff]  ;;  %v236_v14 = vld [vmem:[%s2137_s7 + $0x40] sm:$0xff] }
  0x13   : > { %1706 = vmatprep.mubr.msk.f32.mxu0 %vm255_vm0, %v230_v8  ;;  %v237_v15 = vld [vmem:[%s2137_s7 + $0x48] sm:$0xff]  ;;  %v238_v16 = vld [vmem:[%s2137_s7 + $0x50] sm:$0xff]  ;;  %v239_v17 = vld [vmem:[%s2137_s7 + $0x58] sm:$0xff] }
  0x14   : > { %v240_v18 = vld [vmem:[%s2137_s7 + $0x60] sm:$0xff]  ;;  %v241_v19 = vld [vmem:[%s2137_s7 + $0x68] sm:$0xff]  ;;  %v242_v20 = vld [vmem:[%s2137_s7 + $0x70] sm:$0xff] }
  0x15   : > { %v243_v21 = vld [vmem:[%s2137_s7 + $0x78] sm:$0xff]  ;;  %v641_v7 = vld [vmem:[%s2547_s3] sm:$0xff]  ;;  %v642_v8 = vld [vmem:[%s2547_s3 + $0x8] sm:$0xff] }
  0x16   : > { %1707 = vmatmul.mubr.msk.f32.gmra.mrb[2].mxu0 %vm255_vm0, %v231_v9  ;;  %v643_v9 = vld [vmem:[%s2547_s3 + $0x10] sm:$0xff] }
  0x17   : > { %1709 = vmatprep.mubr.msk.f32.mxu0 %vm255_vm0, %v232_v10  ;;  %v2265_v10 = vpack.c.bf16 %v642_v8, %v641_v7 }
  0x19   : > { %1805 = vmatprep.subr.bf16.mxu1 %v2265_v10  ;;  %1837 = vmatprep.subr.bf16.mxu0 %v2265_v10 }
  0x1a   : > { %1710 = vmatmul.mubr.msk.f32.gmra.mrb[4].mxu0 %vm255_vm0, %v233_v11  ;;  %v644_v11 = vld [vmem:[%s2547_s3 + $0x18] sm:$0xff]  ;;  %1807 = vmatpush3.bf16.msra.mxu1 %v2265_v10 }
  0x1b   : > { %1712 = vmatprep.mubr.msk.f32.mxu0 %vm255_vm0, %v234_v12  ;;  %v2270_v12 = vpack.c.bf16 %v644_v11, %v643_v9  ;;  %1839 = vmatpush3.bf16.msra.mxu0 %v2265_v10 }
  0x1d   : > { %1809 = vmatprep.subr.bf16.mxu1 %v2270_v12  ;;  %1841 = vmatprep.subr.bf16.mxu0 %v2270_v12 }
  0x1e   : > { %1713 = vmatmul.mubr.msk.f32.gmra.mrb[6].mxu0 %vm255_vm0, %v235_v13  ;;  %v645_v13 = vld [vmem:[%s2547_s3 + $0x20] sm:$0xff]  ;;  %1811 = vmatpush3.bf16.msra.mxu1 %v2270_v12 }
  0x1f   : > { %1715 = vmatprep.mubr.msk.f32.mxu0 %vm255_vm0, %v236_v14  ;;  %v646_v14 = vld [vmem:[%s2547_s3 + $0x28] sm:$0xff]  ;;  %1843 = vmatpush3.bf16.msra.mxu0 %v2270_v12 }
  0x22   : > { %1716 = vmatmul.mubr.msk.f32.gmra.mrb[8].mxu0 %vm255_vm0, %v237_v15  ;;  %v2283_v15 = vpack.c.bf16 %v646_v14, %v645_v13 }
  0x23   : > { %1718 = vmatprep.mubr.msk.f32.mxu0 %vm255_vm0, %v238_v16 }
  0x24   : > { %1813 = vmatprep.subr.bf16.mxu1 %v2283_v15  ;;  %1845 = vmatprep.subr.bf16.mxu0 %v2283_v15 }
  0x25   : > { %1815 = vmatpush3.bf16.msra.mxu1 %v2283_v15  ;;  %1847 = vmatpush3.bf16.msra.mxu0 %v2283_v15 }
  0x26   : > { %1719 = vmatmul.mubr.msk.f32.gmra.mrb[10].mxu0 %vm255_vm0, %v239_v17 }
  0x27   : > { %1721 = vmatprep.mubr.msk.f32.mxu0 %vm255_vm0, %v240_v18 }
  0x2a   : > { %1722 = vmatmul.mubr.msk.f32.gmra.mrb[12].mxu0 %vm255_vm0, %v241_v19 }
  0x2b   : > { %1724 = vmatprep.mubr.msk.f32.mxu0 %vm255_vm0, %v242_v20 }
  0x2e   : > { %1725 = vmatmul.mubr.msk.f32.gmra.mrb[14].mxu0 %vm255_vm0, %v243_v21 }
  0xe5   : > { %v1705_v23 = vpop.f32.mrb[0].mxu0 }
  0xe6   : > { %v370_v24 = vpop.f32.mrb[1].mxu0  ;;  %v2180_v26 = vadd.f32 %v1705_v23, %v2174_v22 }
  0xe7   : > { %v2177_v25 = vadd.f32 %v2174_v22, %v370_v24 }
  0xe8   : > { %v1591_v17 = vmul.f32 -1.442695, %v2180_v26 }
  0xe9   : > { %1863 = vtanh.f32 %v2177_v25  ;;  %v1708_v27 = vpop.f32.mrb[2].mxu0  ;;  %v1590_v16 = vmul.f32 -1.442695, %v2177_v25 }
  0xea   : > { %v380_v28 = vpop.f32.mrb[3].mxu0  ;;  %1865 = vtanh.f32 %v2180_v26  ;;  %v2188_v30 = vadd.f32 %v1708_v27, %v2174_v22 }
  0xeb   : > { %v2184_v29 = vadd.f32 %v2174_v22, %v380_v28 }
  0xec   : > { %v1593_v19 = vmul.f32 -1.442695, %v2188_v30 }
  0xed   : > { %1867 = vtanh.f32 %v2184_v29  ;;  %v1711_v31 = vpop.f32.mrb[4].mxu0  ;;  %v1592_v18 = vmul.f32 -1.442695, %v2184_v29 }
  0xee   : > { %v390_v32 = vpop.f32.mrb[5].mxu0  ;;  %1869 = vtanh.f32 %v2188_v30  ;;  %v2196_v34 = vadd.f32 %v1711_v31, %v2174_v22 }
  0xef   : > { %v2192_v33 = vadd.f32 %v2174_v22, %v390_v32 }
  0xf0   : > { %v1595_v21 = vmul.f32 -1.442695, %v2196_v34 }
  0xf1   : > { %1871 = vtanh.f32 %v2192_v33  ;;  %v1714_v35 = vpop.f32.mrb[6].mxu0  ;;  %v1594_v20 = vmul.f32 -1.442695, %v2192_v33 }
  0xf2   : > { %v400_v36 = vpop.f32.mrb[7].mxu0  ;;  %v2200_v38 = vadd.f32 %v1714_v35, %v2174_v22  ;;  %1873 = vtanh.f32 %v2196_v34  ;;  %v647_v35 = vld [vmem:[%s2547_s3 + $0x30] sm:$0xff] }
  0xf3   : > { %v1864_v37 = vpop.eup %1863  ;;  %v2203_v39 = vadd.f32 %v2174_v22, %v400_v36  ;;  %v648_v36 = vld [vmem:[%s2547_s3 + $0x38] sm:$0xff] }
  0xf4   : > { %577 = vrot.lane.b32.xlu0 %v1864_v37, %s2079_s10  ;;  %v1866_v41 = vpop.eup %1865  ;;  %v1597_v24 = vmul.f32 -1.442695, %v2200_v38 }
  0xf5   : > { %1875 = vtanh.f32 %v2203_v39  ;;  %v1717_v40 = vpop.f32.mrb[8].mxu0 }
  0xf6   : > { %v410_v42 = vpop.f32.mrb[9].mxu0  ;;  %1877 = vtanh.f32 %v2200_v38  ;;  %v2212_v44 = vadd.f32 %v1717_v40, %v2174_v22 }
  0xf7   : > { %v1868_v43 = vpop.eup %1867  ;;  %v2218_v49 = vadd.f32 %v2174_v22, %v410_v42 }
  0xf8   : > { %581 = vrot.lane.b32.xlu1 %v1868_v43, %s2079_s10  ;;  %579 = vrot.lane.b32.xlu0 %v1866_v41, %s2079_s10  ;;  %v1870_v46 = vpop.eup %1869  ;;  %1879 = vtanh.f32 %v2212_v44  ;;  %v2306_v41 = vpack.c.bf16 %v648_v36, %v647_v35 }
  0xf9   : > { %v1720_v45 = vpop.f32.mrb[10].mxu0  ;;  %1881 = vtanh.f32 %v2218_v49 }
  0xfa   : > { %v420_v47 = vpop.f32.mrb[11].mxu0  ;;  %v2221_v54 = vadd.f32 %v1720_v45, %v2174_v22  ;;  %1817 = vmatprep.subr.bf16.mxu1 %v2306_v41  ;;  %1849 = vmatprep.subr.bf16.mxu0 %v2306_v41 }
  0xfb   : > { %v1872_v48 = vpop.eup %1871  ;;  %v2228_v58 = vadd.f32 %v2174_v22, %v420_v47  ;;  %1819 = vmatpush3.bf16.msra.mxu1 %v2306_v41  ;;  %1851 = vmatpush3.bf16.msra.mxu0 %v2306_v41 }
  0xfc   : > { %583 = vrot.lane.b32.xlu1 %v1870_v46, %s2079_s10  ;;  %585 = vrot.lane.b32.xlu0 %v1872_v48, %s2079_s10  ;;  %v1874_v51 = vpop.eup %1873  ;;  %1883 = vtanh.f32 %v2221_v54 }
  0xfd   : > { %v1723_v50 = vpop.f32.mrb[12].mxu0  ;;  %1885 = vtanh.f32 %v2228_v58  ;;  %1821 = vmatprep.subr.bf16.mxu1 %v2265_v10 }
  0xfe   : > { %v430_v52 = vpop.f32.mrb[13].mxu0  ;;  %v2232_v59 = vadd.f32 %v1723_v50, %v2174_v22 }
  0xff   : > { %v1876_v53 = vpop.eup %1875  ;;  %v2237_v61 = vadd.f32 %v2174_v22, %v430_v52 }
 0x100   : > { %587 = vrot.lane.b32.xlu1 %v1874_v51, %s2079_s10  ;;  %589 = vrot.lane.b32.xlu0 %v1876_v53, %s2079_s10  ;;  %v1878_v55 = vpop.eup %1877  ;;  %1887 = vtanh.f32 %v2232_v59 }
 0x101   : > { %v1726_v56 = vpop.f32.mrb[14].mxu0  ;;  %1889 = vtanh.f32 %v2237_v61 }
 0x102   : > { %v440_v57 = vpop.f32.mrb[15].mxu0  ;;  %v1880_v60 = vpop.eup %1879  ;;  %v2241_v63 = vadd.f32 %v1726_v56, %v2174_v22 }
 0x103   : > { %v1882_v62 = vpop.eup %1881  ;;  %v2246_v1 = vadd.f32 %v2174_v22, %v440_v57  ;;  %v1596_v22 = vmul.f32 -1.442695, %v2203_v39 }
 0x104   : > { %591 = vrot.lane.b32.xlu1 %v1878_v55, %s2079_s10  ;;  %593 = vrot.lane.b32.xlu0 %v1882_v62, %s2079_s10  ;;  %1891 = vtanh.f32 %v2241_v63 }
 0x105   : > { %1893 = vtanh.f32 %v2246_v1 }
 0x106   : > { %v1884_v0 = vpop.eup %1883  ;;  %1895 = vpow2.f32 %v1590_v16 }
 0x107   : > { %v1886_v2 = vpop.eup %1885  ;;  %1897 = vpow2.f32 %v1591_v17 }
 0x108   : > { %595 = vrot.lane.b32.xlu1 %v1880_v60, %s2079_s10  ;;  %597 = vrot.lane.b32.xlu0 %v1886_v2, %s2079_s10  ;;  %1899 = vpow2.f32 %v1592_v18 }
 0x109   : > { %1901 = vpow2.f32 %v1593_v19 }
 0x10a   : > { %v1888_v3 = vpop.eup %1887  ;;  %1903 = vpow2.f32 %v1594_v20 }
 0x10b   : > { %v1890_v4 = vpop.eup %1889  ;;  %1905 = vpow2.f32 %v1595_v21 }
 0x10c   : > { %599 = vrot.lane.b32.xlu1 %v1884_v0, %s2079_s10  ;;  %601 = vrot.lane.b32.xlu0 %v1890_v4, %s2079_s10  ;;  %1907 = vpow2.f32 %v1596_v22 }
 0x10d   : > { %1909 = vpow2.f32 %v1597_v24 }
 0x10e   : > { %v1892_v5 = vpop.eup %1891 }
 0x10f   : > { %v1894_v6 = vpop.eup %1893 }
 0x110   : > { %603 = vrot.lane.b32.xlu1 %v1888_v3, %s2079_s10  ;;  %605 = vrot.lane.b32.xlu0 %v1894_v6, %s2079_s10  ;;  %v1896_v23 = vpop.eup %1895 }
 0x111   : > { %v1898_v27 = vpop.eup %1897  ;;  %v497_v28 = vadd.f32 1.0, %v1896_v23 }
 0x112   : > { %v1900_v31 = vpop.eup %1899  ;;  %v498_v32 = vadd.f32 1.0, %v1898_v27 }
 0x113   : > { %v1902_v37 = vpop.eup %1901  ;;  %1911 = vrcp.f32 %v497_v28  ;;  %v499_v40 = vadd.f32 1.0, %v1900_v31 }
 0x114   : > { %607 = vrot.lane.b32.xlu1 %v1892_v5, %s2079_s10  ;;  %v1904_v42 = vpop.eup %1903  ;;  %1913 = vrcp.f32 %v498_v32  ;;  %v500_v43 = vadd.f32 1.0, %v1902_v37 }
 0x115   : > { %v1906_v45 = vpop.eup %1905  ;;  %1915 = vrcp.f32 %v499_v40  ;;  %v501_v46 = vadd.f32 1.0, %v1904_v42 }
 0x116   : > { %v1908_v47 = vpop.eup %1907  ;;  %1917 = vrcp.f32 %v500_v43  ;;  %v502_v48 = vadd.f32 1.0, %v1906_v45 }
 0x117   : > { %1919 = vrcp.f32 %v501_v46  ;;  %v503_v50 = vadd.f32 1.0, %v1908_v47  ;;  %v1910_v51 = vpop.eup %1909 }
 0x118   : > { %1921 = vrcp.f32 %v502_v48  ;;  %v504_v56 = vadd.f32 1.0, %v1910_v51 }
 0x119   : > { %1923 = vrcp.f32 %v503_v50 }
 0x11a   : > { %1925 = vrcp.f32 %v504_v56 }
 0x11d   : > { %v1912_v52 = vpop.eup %1911 }
 0x11e   : > { %v1914_v57 = vpop.eup %1913 }
 0x11f   : > { %v1916_v60 = vpop.eup %1915 }
 0x120   : > { %v1918_v4 = vpop.eup %1917 }
 0x121   : > { %v1920_v5 = vpop.eup %1919 }
 0x122   : > { %v1922_v11 = vpop.eup %1921 }
 0x123   : > { %v1924_v13 = vpop.eup %1923 }
 0x124   : > { %v1926_v19 = vpop.eup %1925 }
 0x166   : > { %v578_v53 = vpop.permute.xlu0 %577 }
 0x167   : > { %v625_v55 = vmul.f32 %v1912_v52, %v578_v53 }
 0x169   : > { %664 = vrot.lane.b32.xlu0 %v625_v55, %s2080_s29 }
 0x16a   : > { %v582_v62 = vpop.permute.xlu1 %581  ;;  %v580_v0 = vpop.permute.xlu0 %579 }
 0x16b   : > { %v627_v2 = vmul.f32 %v1916_v60, %v582_v62  ;;  %v626_v3 = vmul.f32 %v1914_v57, %v580_v0 }
 0x16d   : > { %666 = vrot.lane.b32.xlu1 %v626_v3, %s2080_s29  ;;  %668 = vrot.lane.b32.xlu0 %v627_v2, %s2080_s29 }
 0x16e   : > { %v584_v6 = vpop.permute.xlu1 %583  ;;  %v586_v7 = vpop.permute.xlu0 %585 }
 0x16f   : > { %v628_v8 = vmul.f32 %v1918_v4, %v584_v6  ;;  %v629_v9 = vmul.f32 %v1920_v5, %v586_v7 }
 0x171   : > { %670 = vrot.lane.b32.xlu1 %v628_v8, %s2080_s29  ;;  %672 = vrot.lane.b32.xlu0 %v629_v9, %s2080_s29 }
 0x172   : > { %v588_v14 = vpop.permute.xlu1 %587  ;;  %v590_v16 = vpop.permute.xlu0 %589 }
 0x173   : > { %v630_v17 = vmul.f32 %v1922_v11, %v588_v14  ;;  %v631_v18 = vmul.f32 %v1924_v13, %v590_v16 }
 0x175   : > { %674 = vrot.lane.b32.xlu1 %v630_v17, %s2080_s29  ;;  %676 = vrot.lane.b32.xlu0 %v631_v18, %s2080_s29 }
 0x176   : > { %v592_v20 = vpop.permute.xlu1 %591 }
 0x177   : > { %v632_v21 = vmul.f32 %v1926_v19, %v592_v20 }
 0x179   : > { %678 = vrot.lane.b32.xlu1 %v632_v21, %s2080_s29  ;;  %938 = vrot.lane.b32.xlu0 %v2192_v33, %s2079_s10  ;;  %v1601_v33 = vmul.f32 -1.442695, %v2221_v54 }
 0x17d   : > { %940 = vrot.lane.b32.xlu1 %v2196_v34, %s2079_s10  ;;  %1018 = vrot.lane.b32.xlu0 %v2237_v61, %s2081_s30  ;;  %v1602_v34 = vmul.f32 -1.442695, %v2237_v61 }
 0x181   : > { %1020 = vrot.lane.b32.xlu1 %v2232_v59, %s2081_s30  ;;  %942 = vrot.lane.b32.xlu0 %v2203_v39, %s2079_s10  ;;  %v1604_v39 = vmul.f32 -1.442695, %v2246_v1 }
 0x185   : > { %944 = vrot.lane.b32.xlu1 %v2200_v38, %s2079_s10  ;;  %1022 = vrot.lane.b32.xlu0 %v2246_v1, %s2081_s30  ;;  %v594_v38 = vpop.permute.xlu0 %593 }
 0x189   : > { %1024 = vrot.lane.b32.xlu1 %v2241_v63, %s2081_s30  ;;  %936 = vrot.lane.b32.xlu0 %v2188_v30, %s2079_s10  ;;  %v1599_v30 = vmul.f32 -1.442695, %v2212_v44  ;;  %v598_v24 = vpop.permute.xlu0 %597 }
 0x18d   : > { %930 = vrot.lane.b32.xlu1 %v2177_v25, %s2079_s10  ;;  %v1598_v25 = vmul.f32 -1.442695, %v2218_v49  ;;  %v602_v32 = vpop.permute.xlu0 %601 }
 0x18f   : > { %1927 = vpow2.f32 %v1598_v25 }
 0x190   : > { %1929 = vpow2.f32 %v1599_v30 }
 0x191   : > { %932 = vrot.lane.b32.xlu1 %v2180_v26, %s2079_s10  ;;  %v1600_v26 = vmul.f32 -1.442695, %v2228_v58  ;;  %v606_v43 = vpop.permute.xlu0 %605 }
 0x193   : > { %1931 = vpow2.f32 %v1600_v26 }
 0x194   : > { %1933 = vpow2.f32 %v1601_v33 }
 0x195   : > { %1010 = vrot.lane.b32.xlu1 %v2218_v49, %s2081_s30  ;;  %1935 = vpow2.f32 %v1602_v34  ;;  %v596_v49 = vpop.permute.xlu1 %595 }
 0x199   : > { %1012 = vrot.lane.b32.xlu1 %v2212_v44, %s2081_s30  ;;  %v1928_v22 = vpop.eup %1927  ;;  %v1605_v44 = vmul.f32 -1.442695, %v2241_v63 }
 0x19a   : > { %v505_v23 = vadd.f32 1.0, %v1928_v22 }
 0x19d   : > { %934 = vrot.lane.b32.xlu1 %v2184_v29, %s2079_s10  ;;  %v1603_v29 = vmul.f32 -1.442695, %v2232_v59  ;;  %v600_v59 = vpop.permute.xlu1 %599 }
 0x19f   : > { %1937 = vpow2.f32 %v1603_v29 }
 0x1a0   : > { %1939 = vpow2.f32 %v1604_v39 }
 0x1a1   : > { %1014 = vrot.lane.b32.xlu1 %v2228_v58, %s2081_s30  ;;  %v1930_v58 = vpop.eup %1929  ;;  %1941 = vpow2.f32 %v1605_v44  ;;  %v604_v63 = vpop.permute.xlu1 %603 }
 0x1a2   : > { %v506_v27 = vadd.f32 1.0, %v1930_v58  ;;  %1943 = vrcp.f32 %v505_v23 }
 0x1a4   : > { %1945 = vrcp.f32 %v506_v27 }
 0x1a5   : > { %1016 = vrot.lane.b32.xlu1 %v2221_v54, %s2081_s30  ;;  %v1932_v54 = vpop.eup %1931  ;;  %v608_v50 = vpop.permute.xlu1 %607 }
 0x1a6   : > { %v1934_v61 = vpop.eup %1933  ;;  %v507_v28 = vadd.f32 1.0, %v1932_v54 }
 0x1a7   : > { %v1936_v31 = vpop.eup %1935  ;;  %v508_v1 = vadd.f32 1.0, %v1934_v61 }
 0x1a8   : > { %1947 = vrcp.f32 %v507_v28  ;;  %v509_v36 = vadd.f32 1.0, %v1936_v31 }
 0x1a9   : > { %v1938_v35 = vpop.eup %1937  ;;  %1949 = vrcp.f32 %v508_v1 }
 0x1aa   : > { %v1940_v37 = vpop.eup %1939  ;;  %v510_v40 = vadd.f32 1.0, %v1938_v35  ;;  %1951 = vrcp.f32 %v509_v36 }
 0x1ab   : > { %v511_v42 = vadd.f32 1.0, %v1940_v37  ;;  %v1942_v45 = vpop.eup %1941 }
 0x1ac   : > { %v1944_v46 = vpop.eup %1943  ;;  %1953 = vrcp.f32 %v510_v40  ;;  %v512_v48 = vadd.f32 1.0, %v1942_v45 }
 0x1ad   : > { %v633_v47 = vmul.f32 %v1944_v46, %v594_v38  ;;  %1955 = vrcp.f32 %v511_v42 }
 0x1ae   : > { %v1946_v52 = vpop.eup %1945  ;;  %1957 = vrcp.f32 %v512_v48 }
 0x1af   : > { %v634_v56 = vmul.f32 %v1946_v52, %v596_v49 }
 0x1b2   : > { %v1948_v55 = vpop.eup %1947 }
 0x1b3   : > { %v635_v57 = vmul.f32 %v1948_v55, %v598_v24  ;;  %v1950_v0 = vpop.eup %1949 }
 0x1b4   : > { %v1952_v4 = vpop.eup %1951  ;;  %v636_v5 = vmul.f32 %v1950_v0, %v600_v59 }
 0x1b5   : > { %v637_v6 = vmul.f32 %v1952_v4, %v602_v32 }
 0x1b6   : > { %v1954_v9 = vpop.eup %1953 }
 0x1b7   : > { %v1956_v14 = vpop.eup %1955  ;;  %v638_v16 = vmul.f32 %v1954_v9, %v604_v63 }
 0x1b8   : > { %v639_v17 = vmul.f32 %v1956_v14, %v606_v43  ;;  %v1958_v21 = vpop.eup %1957 }
 0x1b9   : > { %v640_v25 = vmul.f32 %v1958_v21, %v608_v50 }
 0x1db   : > { %v665_v51 = vpop.permute.xlu0 %664 }
 0x1dc   : > { %v688_v53 = vsel %vm255_vm0, %v665_v51, %v633_v47 }
 0x1dd   : > { %1743 = vmatprep.mubr.msk.f32.mxu1 %vm696_vm1, %v688_v53 }
 0x1df   : > { %v667_v60 = vpop.permute.xlu1 %666  ;;  %v669_v62 = vpop.permute.xlu0 %668 }
 0x1e0   : > { %v689_v2 = vsel %vm255_vm0, %v667_v60, %v634_v56  ;;  %v690_v3 = vsel %vm255_vm0, %v669_v62, %v635_v57 }
 0x1e1   : > { %1744 = vmatmul.mubr.msk.f32.vlgmr.msra.gmra.mrb[0].mxu1 %vm696_vm1, %v689_v2 }
 0x1e2   : > { %1746 = vmatprep.mubr.msk.f32.mxu1 %vm696_vm1, %v690_v3  ;;  %1823 = vmatpush3.bf16.msra.mxu1 %v2265_v10 }
 0x1e3   : > { %v671_v7 = vpop.permute.xlu1 %670  ;;  %v673_v8 = vpop.permute.xlu0 %672  ;;  %1825 = vmatprep.subr.bf16.mxu1 %v2270_v12 }
 0x1e4   : > { %v691_v11 = vsel %vm255_vm0, %v671_v7, %v636_v5  ;;  %v692_v13 = vsel %vm255_vm0, %v673_v8, %v637_v6 }
 0x1e5   : > { %1747 = vmatmul.mubr.msk.f32.gmra.mrb[2].mxu1 %vm696_vm1, %v691_v11 }
 0x1e6   : > { %1749 = vmatprep.mubr.msk.f32.mxu1 %vm696_vm1, %v692_v13  ;;  %1827 = vmatpush3.bf16.msra.mxu1 %v2270_v12 }
 0x1e7   : > { %v675_v18 = vpop.permute.xlu1 %674  ;;  %v677_v10 = vpop.permute.xlu0 %676  ;;  %1829 = vmatprep.subr.bf16.mxu1 %v2283_v15 }
 0x1e8   : > { %v693_v19 = vsel %vm255_vm0, %v675_v18, %v638_v16  ;;  %v694_v20 = vsel %vm255_vm0, %v677_v10, %v639_v17 }
 0x1e9   : > { %1750 = vmatmul.mubr.msk.f32.gmra.mrb[4].mxu1 %vm696_vm1, %v693_v19 }
 0x1ea   : > { %1752 = vmatprep.mubr.msk.f32.mxu1 %vm696_vm1, %v694_v20  ;;  %1831 = vmatpush3.bf16.msra.mxu1 %v2283_v15  ;;  %v2391_v15 = vld [vmem:[%s2548_s4] ss:$0 sm:$0xff] }
 0x1eb   : > { %v679_v30 = vpop.permute.xlu1 %678  ;;  %1833 = vmatprep.subr.bf16.mxu1 %v2306_v41  ;;  %v939_v4 = vpop.permute.xlu0 %938 }
 0x1ec   : > { %v695_v12 = vsel %vm255_vm0, %v679_v30, %v640_v25 }
 0x1ed   : > { %1753 = vmatmul.mubr.msk.f32.gmra.mrb[6].mxu1 %vm696_vm1, %v695_v12 }
 0x1ee   : > { %1835 = vmatpush3.bf16.msra.mxu1 %v2306_v41 }
 0x1ef   : > { %v2384_v34 = vpop.permute.xlu1 %940  ;;  %v1019_v18 = vpop.permute.xlu0 %1018 }
 0x1f3   : > { %v1021_v44 = vpop.permute.xlu1 %1020  ;;  %v943_v12 = vpop.permute.xlu0 %942 }
 0x1f7   : > { %v2401_v1 = vpop.permute.xlu1 %944 }
 0x1fb   : > { %v1025_v40 = vpop.permute.xlu1 %1024 }
 0x1ff   : > { %v2411_v53 = vpop.permute.xlu1 %930 }
 0x203   : > { %v933_v0 = vpop.permute.xlu1 %932 }
 0x207   : > { %v1011_v13 = vpop.permute.xlu1 %1010 }
 0x20b   : > { %v1013_v30 = vpop.permute.xlu1 %1012 }
 0x2b4   : > { %v1745_v26 = vpop.f32.mrb[0].mxu1 }
 0x2b5   : > { %v787_v33 = vpop.f32.mrb[1].mxu1  ;;  %v793_v58 = vadd.f32 %v1745_v26, %v2391_v15 }
 0x2b6   : > { %v2398_v59 = vadd.f32 %v2391_v15, %v787_v33 }
 0x2b7   : > { %v1616_v28 = vmul.f32 -1.442695, %v793_v58 }
 0x2b8   : > { %v1748_v29 = vpop.f32.mrb[2].mxu1  ;;  %v1615_v35 = vmul.f32 -1.442695, %v2398_v59 }
 0x2b9   : > { %v2386_v38 = vpop.f32.mrb[3].mxu1  ;;  %v2406_v43 = vadd.f32 %v1748_v29, %v2391_v15 }
 0x2ba   : > { %v798_v9 = vadd.f32 %v2391_v15, %v2386_v38  ;;  %v935_v38 = vpop.permute.xlu1 %934 }
 0x2bb   : > { %v1618_v51 = vmul.f32 -1.442695, %v2406_v43 }
 0x2bc   : > { %v1751_v39 = vpop.f32.mrb[4].mxu1  ;;  %v1617_v10 = vmul.f32 -1.442695, %v798_v9 }
 0x2bd   : > { %v813_v22 = vadd.f32 %v1751_v39, %v2391_v15  ;;  %v807_v49 = vpop.f32.mrb[5].mxu1 }
 0x2be   : > { %v808_v41 = vadd.f32 %v2391_v15, %v807_v49  ;;  %v1023_v49 = vpop.permute.xlu0 %1022 }
 0x2bf   : > { %v1620_v23 = vmul.f32 -1.442695, %v813_v22  ;;  %1959 = vtanh.f32 %v813_v22 }
 0x2c0   : > { %v1619_v24 = vmul.f32 -1.442695, %v808_v41  ;;  %1961 = vtanh.f32 %v808_v41  ;;  %v1754_v54 = vpop.f32.mrb[6].mxu1 }
 0x2c1   : > { %1963 = vpow2.f32 %v1620_v23  ;;  %v823_v27 = vadd.f32 %v1754_v54, %v2391_v15  ;;  %v817_v61 = vpop.f32.mrb[7].mxu1 }
 0x2c2   : > { %1965 = vpow2.f32 %v1619_v24  ;;  %v818_v32 = vadd.f32 %v2391_v15, %v817_v61  ;;  %v1015_v24 = vpop.permute.xlu1 %1014  ;;  %v937_v54 = vpop.permute.xlu0 %936 }
 0x2c3   : > { %v1622_v31 = vmul.f32 -1.442695, %v823_v27  ;;  %1967 = vtanh.f32 %v823_v27 }
 0x2c4   : > { %v1621_v36 = vmul.f32 -1.442695, %v818_v32 }
 0x2c5   : > { %1969 = vpow2.f32 %v1622_v31 }
 0x2c6   : > { %1971 = vpow2.f32 %v1616_v28 }
 0x2c7   : > { %1973 = vtanh.f32 %v818_v32 }
 0x2c8   : > { %1975 = vpow2.f32 %v1615_v35 }
 0x2c9   : > { %v1960_v37 = vpop.eup %1959  ;;  %1977 = vpow2.f32 %v1621_v36 }
 0x2ca   : > { %v1962_v63 = vpop.eup %1961  ;;  %900 = vrot.lane.b32.xlu0 %v1960_v37, %s2079_s10 }
 0x2cb   : > { %v1964_v42 = vpop.eup %1963 }
 0x2cc   : > { %v1966_v45 = vpop.eup %1965  ;;  %v855_v46 = vadd.f32 1.0, %v1964_v42 }
 0x2cd   : > { %v1968_v47 = vpop.eup %1967  ;;  %v854_v48 = vadd.f32 1.0, %v1966_v45 }
 0x2ce   : > { %1979 = vrcp.f32 %v855_v46  ;;  %898 = vrot.lane.b32.xlu0 %v1962_v63, %s2079_s10  ;;  %904 = vrot.lane.b32.xlu1 %v1968_v47, %s2079_s10 }
 0x2cf   : > { %v1970_v50 = vpop.eup %1969  ;;  %1981 = vrcp.f32 %v854_v48 }
 0x2d0   : > { %v1972_v52 = vpop.eup %1971  ;;  %v857_v55 = vadd.f32 1.0, %v1970_v50 }
 0x2d1   : > { %v1974_v56 = vpop.eup %1973  ;;  %v851_v60 = vadd.f32 1.0, %v1972_v52 }
 0x2d2   : > { %1983 = vrcp.f32 %v857_v55  ;;  %902 = vrot.lane.b32.xlu0 %v1974_v56, %s2079_s10  ;;  %v1976_v57 = vpop.eup %1975 }
 0x2d3   : > { %1985 = vpow2.f32 %v1618_v51  ;;  %v1978_v62 = vpop.eup %1977  ;;  %v850_v2 = vadd.f32 1.0, %v1976_v57 }
 0x2d4   : > { %1987 = vtanh.f32 %v793_v58  ;;  %v856_v5 = vadd.f32 1.0, %v1978_v62 }
 0x2d5   : > { %1989 = vrcp.f32 %v851_v60 }
 0x2d6   : > { %1991 = vrcp.f32 %v850_v2 }
 0x2d7   : > { %1993 = vrcp.f32 %v856_v5 }
 0x2d8   : > { %v2414_v3 = vpop.eup %1979  ;;  %1995 = vpow2.f32 %v1617_v10 }
 0x2d9   : > { %v1039_v6 = vmul.f32 %v2414_v3, %v1021_v44  ;;  %v959_v7 = vmul.f32 %v2414_v3, %v2384_v34  ;;  %v2419_v8 = vpop.eup %1981 }
 0x2da   : > { %v958_v17 = vmul.f32 %v2419_v8, %v939_v4  ;;  %v1038_v21 = vmul.f32 %v2419_v8, %v1019_v18 }
 0x2db   : > { %1060 = vrot.lane.b32.xlu1 %v1039_v6, %s2081_s30  ;;  %980 = vrot.lane.b32.xlu0 %v959_v7, %s2080_s29 }
 0x2dc   : > { %v2425_v11 = vpop.eup %1983 }
 0x2dd   : > { %v1986_v14 = vpop.eup %1985  ;;  %v1041_v16 = vmul.f32 %v2425_v11, %v1025_v40  ;;  %v961_v34 = vmul.f32 %v2425_v11, %v2401_v1 }
 0x2de   : > { %v853_v19 = vadd.f32 1.0, %v1986_v14  ;;  %v1988_v20 = vpop.eup %1987 }
 0x2df   : > { %1064 = vrot.lane.b32.xlu1 %v1041_v16, %s2081_s30  ;;  %978 = vrot.lane.b32.xlu0 %v958_v17, %s2080_s29  ;;  %v2432_v25 = vpop.eup %1989 }
 0x2e0   : > { %1997 = vrcp.f32 %v853_v19  ;;  %v2436_v26 = vpop.eup %1991  ;;  %v955_v33 = vmul.f32 %v2432_v25, %v933_v0  ;;  %v1035_v58 = vmul.f32 %v2432_v25, %v1013_v30 }
 0x2e1   : > { %v2441_v29 = vpop.eup %1993  ;;  %1999 = vtanh.f32 %v2398_v59  ;;  %v1034_v39 = vmul.f32 %v2436_v26, %v1011_v13  ;;  %v1017_v59 = vpop.permute.xlu1 %1016  ;;  %v954_v31 = vmul.f32 %v2436_v26, %v2411_v53 }
 0x2e2   : > { %v960_v22 = vmul.f32 %v2441_v29, %v943_v12  ;;  %v1996_v44 = vpop.eup %1995  ;;  %v1040_v41 = vmul.f32 %v2441_v29, %v1023_v49  ;;  %2001 = vtanh.f32 %v798_v9 }
 0x2e3   : > { %892 = vrot.lane.b32.xlu1 %v1988_v20, %s2079_s10  ;;  %1058 = vrot.lane.b32.xlu0 %v1038_v21, %s2081_s30  ;;  %v852_v27 = vadd.f32 1.0, %v1996_v44  ;;  %2003 = vtanh.f32 %v2406_v43 }
 0x2e5   : > { %2005 = vrcp.f32 %v852_v27 }
 0x2e7   : > { %972 = vrot.lane.b32.xlu1 %v955_v33, %s2080_s29  ;;  %984 = vrot.lane.b32.xlu0 %v961_v34, %s2080_s29 }
 0x2ea   : > { %v2452_v23 = vpop.eup %1997 }
 0x2eb   : > { %1050 = vrot.lane.b32.xlu1 %v1034_v39, %s2081_s30  ;;  %982 = vrot.lane.b32.xlu0 %v960_v22, %s2080_s29  ;;  %v957_v61 = vmul.f32 %v2452_v23, %v937_v54  ;;  %v2000_v28 = vpop.eup %1999  ;;  %v1037_v32 = vmul.f32 %v2452_v23, %v1017_v59 }
 0x2ec   : > { %v2002_v1 = vpop.eup %2001 }
 0x2ed   : > { %v2004_v35 = vpop.eup %2003 }
 0x2ef   : > { %1052 = vrot.lane.b32.xlu1 %v1035_v58, %s2081_s30  ;;  %1062 = vrot.lane.b32.xlu0 %v1040_v41, %s2081_s30  ;;  %v2006_v36 = vpop.eup %2005 }
 0x2f0   : > { %v956_v37 = vmul.f32 %v2006_v36, %v935_v38  ;;  %v1036_v63 = vmul.f32 %v2006_v36, %v1015_v24 }
 0x2f3   : > { %890 = vrot.lane.b32.xlu0 %v2000_v28, %s2079_s10  ;;  %976 = vrot.lane.b32.xlu1 %v957_v61, %s2080_s29 }
 0x2f7   : > { %970 = vrot.lane.b32.xlu0 %v954_v31, %s2080_s29  ;;  %1056 = vrot.lane.b32.xlu1 %v1037_v32, %s2081_s30 }
 0x2fb   : > { %894 = vrot.lane.b32.xlu0 %v2002_v1, %s2079_s10 }
 0x2ff   : > { %896 = vrot.lane.b32.xlu0 %v2004_v35, %s2079_s10 }
 0x303   : > { %974 = vrot.lane.b32.xlu0 %v956_v37, %s2080_s29 }
 0x307   : > { %1054 = vrot.lane.b32.xlu0 %v1036_v63, %s2081_s30 }
 0x33c   : > { %v901_v40 = vpop.permute.xlu0 %900 }
 0x33d   : > { %v919_v46 = vmul.f32 %v2414_v3, %v901_v40 }
 0x340   : > { %v899_v42 = vpop.permute.xlu0 %898  ;;  %v905_v43 = vpop.permute.xlu1 %904 }
 0x341   : > { %v918_v55 = vmul.f32 %v2419_v8, %v899_v42  ;;  %v921_v0 = vmul.f32 %v2425_v11, %v905_v43 }
 0x344   : > { %v903_v45 = vpop.permute.xlu0 %902 }
 0x345   : > { %v920_v9 = vmul.f32 %v2441_v29, %v903_v45 }
 0x34d   : > { %v1061_v47 = vpop.permute.xlu1 %1060  ;;  %v981_v48 = vpop.permute.xlu0 %980 }
 0x34e   : > { %v999_v50 = vadd.f32 %v981_v48, %v919_v46 }
 0x350   : > { %v1079_v51 = vadd.f32 %v1061_v47, %v999_v50 }
 0x351   : > { %v1065_v52 = vpop.permute.xlu1 %1064  ;;  %v979_v53 = vpop.permute.xlu0 %978 }
 0x352   : > { %2007 = vtanh.f32 %v1079_v51  ;;  %v998_v56 = vadd.f32 %v979_v53, %v918_v55 }
 0x355   : > { %v1059_v57 = vpop.permute.xlu0 %1058  ;;  %v893_v62 = vpop.permute.xlu1 %892 }
 0x356   : > { %v1078_v60 = vadd.f32 %v1059_v57, %v998_v56  ;;  %v915_v54 = vmul.f32 %v2432_v25, %v893_v62 }
 0x358   : > { %2009 = vtanh.f32 %v1078_v60 }
 0x359   : > { %v985_v2 = vpop.permute.xlu0 %984  ;;  %v973_v6 = vpop.permute.xlu1 %972 }
 0x35a   : > { %v1001_v4 = vadd.f32 %v985_v2, %v921_v0  ;;  %v995_v27 = vadd.f32 %v973_v6, %v915_v54 }
 0x35c   : > { %v2008_v5 = vpop.eup %2007  ;;  %v1081_v3 = vadd.f32 %v1065_v52, %v1001_v4 }
 0x35d   : > { %1096 = vrot.lane.b32.xlu1 %v2008_v5, %s2079_s10  ;;  %v983_v7 = vpop.permute.xlu0 %982  ;;  %v1051_v17 = vpop.permute.xlu1 %1050 }
 0x35e   : > { %2011 = vtanh.f32 %v1081_v3  ;;  %v1000_v8 = vadd.f32 %v983_v7, %v920_v9 }
 0x361   : > { %v1063_v13 = vpop.permute.xlu0 %1062  ;;  %v1053_v10 = vpop.permute.xlu1 %1052 }
 0x362   : > { %v2010_v14 = vpop.eup %2009  ;;  %v1080_v16 = vadd.f32 %v1063_v13, %v1000_v8  ;;  %v1075_v61 = vadd.f32 %v1053_v10, %v995_v27 }
 0x363   : > { %1094 = vrot.lane.b32.xlu0 %v2010_v14, %s2079_s10 }
 0x364   : > { %2013 = vtanh.f32 %v1080_v16 }
 0x365   : > { %v891_v11 = vpop.permute.xlu0 %890  ;;  %v977_v30 = vpop.permute.xlu1 %976 }
 0x366   : > { %v914_v49 = vmul.f32 %v2436_v26, %v891_v11 }
 0x368   : > { %v2012_v18 = vpop.eup %2011 }
 0x369   : > { %1100 = vrot.lane.b32.xlu1 %v2012_v18, %s2079_s10  ;;  %v971_v19 = vpop.permute.xlu0 %970  ;;  %v1057_v29 = vpop.permute.xlu1 %1056 }
 0x36a   : > { %v994_v41 = vadd.f32 %v971_v19, %v914_v49 }
 0x36d   : > { %v895_v20 = vpop.permute.xlu0 %894 }
 0x36e   : > { %v2014_v21 = vpop.eup %2013  ;;  %v916_v39 = vmul.f32 %v2006_v36, %v895_v20 }
 0x36f   : > { %1098 = vrot.lane.b32.xlu0 %v2014_v21, %s2079_s10 }
 0x371   : > { %v897_v12 = vpop.permute.xlu0 %896 }
 0x372   : > { %v917_v33 = vmul.f32 %v2452_v23, %v897_v12  ;;  %v1074_v23 = vadd.f32 %v1051_v17, %v994_v41 }
 0x374   : > { %v997_v34 = vadd.f32 %v977_v30, %v917_v33  ;;  %2015 = vtanh.f32 %v1074_v23 }
 0x375   : > { %v975_v38 = vpop.permute.xlu0 %974  ;;  %2017 = vtanh.f32 %v1075_v61 }
 0x376   : > { %v1077_v22 = vadd.f32 %v1057_v29, %v997_v34  ;;  %v996_v44 = vadd.f32 %v975_v38, %v916_v39 }
 0x378   : > { %1265 = vrot.lane.b32.xlu1 %v1077_v22, %s2079_s10 }
 0x379   : > { %v1055_v58 = vpop.permute.xlu0 %1054 }
 0x37a   : > { %v1076_v24 = vadd.f32 %v1055_v58, %v996_v44 }
 0x37c   : > { %1305 = vrot.lane.b32.xlu1 %v1081_v3, %s2081_s30  ;;  %1263 = vrot.lane.b32.xlu0 %v1076_v24, %s2079_s10  ;;  %2019 = vtanh.f32 %v1076_v24 }
 0x37d   : > { %2021 = vtanh.f32 %v1077_v22 }
 0x37e   : > { %v2016_v28 = vpop.eup %2015 }
 0x37f   : > { %v2018_v31 = vpop.eup %2017 }
 0x380   : > { %1259 = vrot.lane.b32.xlu1 %v1074_v23, %s2079_s10  ;;  %1303 = vrot.lane.b32.xlu0 %v1080_v16, %s2081_s30 }
 0x384   : > { %1261 = vrot.lane.b32.xlu1 %v1075_v61, %s2079_s10 }
 0x386   : > { %v2020_v35 = vpop.eup %2019 }
 0x387   : > { %v2022_v37 = vpop.eup %2021 }
 0x388   : > { %1299 = vrot.lane.b32.xlu1 %v1078_v60, %s2081_s30 }
 0x38c   : > { %1301 = vrot.lane.b32.xlu1 %v1079_v51, %s2081_s30 }
 0x3cf   : > { %v1097_v26 = vpop.permute.xlu1 %1096 }
 0x3d0   : > { %v1107_v32 = vsel %vm255_vm0, %v2018_v31, %v1097_v26 }
 0x3d5   : > { %v1095_v59 = vpop.permute.xlu0 %1094 }
 0x3d6   : > { %v1106_v25 = vsel %vm255_vm0, %v2016_v28, %v1095_v59 }
 0x3d7   : > { %1771 = vmatprep.mubr.msk.f32.mxu1 %vm696_vm1, %v1106_v25 }
 0x3d8   : > { %1772 = vmatmul.mubr.msk.f32.vlgmr.msra.gmra.mrb[8].mxu1 %vm696_vm1, %v1107_v32 }
 0x3db   : > { %v1101_v1 = vpop.permute.xlu1 %1100 }
 0x3dc   : > { %v1109_v40 = vsel %vm255_vm0, %v2022_v37, %v1101_v1 }
 0x3e1   : > { %v1099_v36 = vpop.permute.xlu0 %1098 }
 0x3e2   : > { %v1108_v63 = vsel %vm255_vm0, %v2020_v35, %v1099_v36 }
 0x3e3   : > { %1774 = vmatprep.mubr.msk.f32.mxu1 %vm696_vm1, %v1108_v63 }
 0x3e4   : > { %1775 = vmatmul.mubr.msk.f32.gmra.mrb[10].mxu1 %vm696_vm1, %v1109_v40 }
 0x3ea   : > { %v1266_v56 = vpop.permute.xlu1 %1265 }
 0x3ee   : > { %v1306_v4 = vpop.permute.xlu1 %1305  ;;  %v1264_v10 = vpop.permute.xlu0 %1263 }
 0x3f2   : > { %v1260_v9 = vpop.permute.xlu1 %1259  ;;  %v1304_v12 = vpop.permute.xlu0 %1303 }
 0x3f6   : > { %v1262_v14 = vpop.permute.xlu1 %1261 }
 0x3fa   : > { %v1300_v30 = vpop.permute.xlu1 %1299 }
 0x3fe   : > { %v1302_v29 = vpop.permute.xlu1 %1301 }
 0x4ab   : > { %v1773_v42 = vpop.f32.mrb[8].mxu1 }
 0x4ac   : > { %v1188_v43 = vpop.f32.mrb[9].mxu1  ;;  %v1194_v46 = vadd.f32 %v1773_v42, %v2391_v15 }
 0x4ad   : > { %v1189_v55 = vadd.f32 %v2391_v15, %v1188_v43 }
 0x4ae   : > { %v1628_v53 = vmul.f32 -1.442695, %v1194_v46 }
 0x4af   : > { %v1627_v60 = vmul.f32 -1.442695, %v1189_v55 }
 0x4b7   : > { %v1776_v45 = vpop.f32.mrb[10].mxu1 }
 0x4b8   : > { %v1204_v47 = vadd.f32 %v1776_v45, %v2391_v15  ;;  %v1198_v48 = vpop.f32.mrb[11].mxu1 }
 0x4b9   : > { %v1199_v50 = vadd.f32 %v2391_v15, %v1198_v48 }
 0x4ba   : > { %v1630_v51 = vmul.f32 -1.442695, %v1204_v47  ;;  %2023 = vtanh.f32 %v1204_v47 }
 0x4bb   : > { %v1629_v52 = vmul.f32 -1.442695, %v1199_v50  ;;  %2025 = vtanh.f32 %v1199_v50 }
 0x4bc   : > { %2027 = vpow2.f32 %v1630_v51 }
 0x4bd   : > { %2029 = vpow2.f32 %v1629_v52 }
 0x4be   : > { %2031 = vpow2.f32 %v1628_v53 }
 0x4bf   : > { %2033 = vpow2.f32 %v1627_v60 }
 0x4c4   : > { %v2024_v57 = vpop.eup %2023 }
 0x4c5   : > { %1245 = vrot.lane.b32.xlu0 %v2024_v57, %s2079_s10  ;;  %v2026_v62 = vpop.eup %2025 }
 0x4c6   : > { %v2028_v0 = vpop.eup %2027 }
 0x4c7   : > { %v2030_v2 = vpop.eup %2029  ;;  %v1222_v5 = vadd.f32 1.0, %v2028_v0 }
 0x4c8   : > { %v2032_v3 = vpop.eup %2031  ;;  %v1221_v6 = vadd.f32 1.0, %v2030_v2 }
 0x4c9   : > { %1243 = vrot.lane.b32.xlu0 %v2026_v62, %s2079_s10  ;;  %2035 = vrcp.f32 %v1222_v5  ;;  %v1220_v7 = vadd.f32 1.0, %v2032_v3  ;;  %v2034_v8 = vpop.eup %2033 }
 0x4ca   : > { %2037 = vrcp.f32 %v1221_v6  ;;  %v1219_v16 = vadd.f32 1.0, %v2034_v8 }
 0x4cb   : > { %2039 = vtanh.f32 %v1194_v46 }
 0x4cc   : > { %2041 = vrcp.f32 %v1220_v7 }
 0x4cd   : > { %2043 = vtanh.f32 %v1189_v55 }
 0x4ce   : > { %2045 = vrcp.f32 %v1219_v16 }
 0x4d3   : > { %v2036_v13 = vpop.eup %2035 }
 0x4d4   : > { %v1314_v17 = vmul.f32 %v2036_v13, %v1306_v4  ;;  %v1274_v11 = vmul.f32 %v2036_v13, %v1266_v56  ;;  %v2038_v18 = vpop.eup %2037 }
 0x4d5   : > { %v2040_v19 = vpop.eup %2039  ;;  %v1273_v20 = vmul.f32 %v2038_v18, %v1264_v10  ;;  %v1313_v34 = vmul.f32 %v2038_v18, %v1304_v12 }
 0x4d6   : > { %1325 = vrot.lane.b32.xlu1 %v1314_v17, %s2081_s30  ;;  %1285 = vrot.lane.b32.xlu0 %v1274_v11, %s2080_s29  ;;  %v2042_v21 = vpop.eup %2041 }
 0x4d7   : > { %v1272_v33 = vmul.f32 %v2042_v21, %v1262_v14  ;;  %v2044_v38 = vpop.eup %2043  ;;  %v1312_v39 = vmul.f32 %v2042_v21, %v1302_v29 }
 0x4d8   : > { %v2046_v22 = vpop.eup %2045 }
 0x4d9   : > { %v1271_v49 = vmul.f32 %v2046_v22, %v1260_v9  ;;  %v1311_v44 = vmul.f32 %v2046_v22, %v1300_v30 }
 0x4da   : > { %1241 = vrot.lane.b32.xlu1 %v2040_v19, %s2079_s10  ;;  %1283 = vrot.lane.b32.xlu0 %v1273_v20, %s2080_s29 }
 0x4de   : > { %1281 = vrot.lane.b32.xlu1 %v1272_v33, %s2080_s29  ;;  %1323 = vrot.lane.b32.xlu0 %v1313_v34, %s2081_s30 }
 0x4e2   : > { %1321 = vrot.lane.b32.xlu1 %v1312_v39, %s2081_s30  ;;  %1239 = vrot.lane.b32.xlu0 %v2044_v38, %s2079_s10 }
 0x4e6   : > { %1279 = vrot.lane.b32.xlu0 %v1271_v49, %s2080_s29 }
 0x4ea   : > { %1319 = vrot.lane.b32.xlu0 %v1311_v44, %s2081_s30 }
 0x537   : > { %v1246_v58 = vpop.permute.xlu0 %1245 }
 0x538   : > { %v1254_v24 = vmul.f32 %v2036_v13, %v1246_v58 }
 0x53b   : > { %v1244_v41 = vpop.permute.xlu0 %1243 }
 0x53c   : > { %v1253_v59 = vmul.f32 %v2038_v18, %v1244_v41 }
 0x548   : > { %v1326_v54 = vpop.permute.xlu1 %1325  ;;  %v1286_v23 = vpop.permute.xlu0 %1285 }
 0x549   : > { %v1294_v27 = vadd.f32 %v1286_v23, %v1254_v24 }
 0x54b   : > { %v1334_v61 = vadd.f32 %v1326_v54, %v1294_v27 }
 0x54c   : > { %v1242_v26 = vpop.permute.xlu1 %1241  ;;  %v1284_v28 = vpop.permute.xlu0 %1283 }
 0x54d   : > { %2047 = vtanh.f32 %v1334_v61  ;;  %v1293_v31 = vadd.f32 %v1284_v28, %v1253_v59  ;;  %v1252_v36 = vmul.f32 %v2042_v21, %v1242_v26 }
 0x550   : > { %v1324_v25 = vpop.permute.xlu0 %1323  ;;  %v1282_v32 = vpop.permute.xlu1 %1281 }
 0x551   : > { %v1333_v1 = vadd.f32 %v1324_v25, %v1293_v31  ;;  %v1292_v40 = vadd.f32 %v1282_v32, %v1252_v36 }
 0x553   : > { %2049 = vtanh.f32 %v1333_v1 }
 0x554   : > { %v1240_v35 = vpop.permute.xlu0 %1239  ;;  %v1322_v63 = vpop.permute.xlu1 %1321 }
 0x555   : > { %v1332_v43 = vadd.f32 %v1322_v63, %v1292_v40  ;;  %v1251_v45 = vmul.f32 %v2046_v22, %v1240_v35 }
 0x557   : > { %v2048_v37 = vpop.eup %2047 }
 0x558   : > { %1343 = vrot.lane.b32.xlu1 %v2048_v37, %s2079_s10  ;;  %v1280_v42 = vpop.permute.xlu0 %1279 }
 0x559   : > { %v1291_v48 = vadd.f32 %v1280_v42, %v1251_v45 }
 0x55c   : > { %1458 = vrot.lane.b32.xlu1 %v1332_v43, %s2079_s10  ;;  %v1320_v47 = vpop.permute.xlu0 %1319 }
 0x55d   : > { %v2050_v46 = vpop.eup %2049  ;;  %v1331_v50 = vadd.f32 %v1320_v47, %v1291_v48 }
 0x55e   : > { %1341 = vrot.lane.b32.xlu0 %v2050_v46, %s2079_s10 }
 0x55f   : > { %2051 = vtanh.f32 %v1331_v50 }
 0x560   : > { %1478 = vrot.lane.b32.xlu1 %v1334_v61, %s2081_s30  ;;  %2053 = vtanh.f32 %v1332_v43 }
 0x562   : > { %1456 = vrot.lane.b32.xlu0 %v1331_v50, %s2079_s10 }
 0x566   : > { %1476 = vrot.lane.b32.xlu0 %v1333_v1, %s2081_s30 }
 0x569   : > { %v2052_v52 = vpop.eup %2051 }
 0x56a   : > { %v2054_v55 = vpop.eup %2053 }
 0x5ca   : > { %v1344_v51 = vpop.permute.xlu1 %1343 }
 0x5cb   : > { %v1348_v57 = vsel %vm255_vm0, %v2054_v55, %v1344_v51 }
 0x5ce   : > { %v1459_v14 = vpop.permute.xlu1 %1458 }
 0x5d0   : > { %v1342_v53 = vpop.permute.xlu0 %1341 }
 0x5d1   : > { %v1347_v56 = vsel %vm255_vm0, %v2052_v52, %v1342_v53 }
 0x5d2   : > { %1793 = vmatprep.mubr.msk.f32.mxu0 %vm696_vm1, %v1347_v56  ;;  %v1479_v10 = vpop.permute.xlu1 %1478 }
 0x5d3   : > { %1794 = vmatmul.mubr.msk.f32.vlgmr.msra.gmra.mrb[16].mxu0 %vm696_vm1, %v1348_v57 }
 0x6a6   : > { %v1795_v60 = vpop.f32.mrb[16].mxu0 }
 0x6a7   : > { %v1427_v62 = vadd.f32 %v1795_v60, %v2391_v15  ;;  %v1421_v0 = vpop.f32.mrb[17].mxu0 }
 0x6a8   : > { %v1422_v2 = vadd.f32 %v2391_v15, %v1421_v0  ;;  %v1457_v15 = vpop.permute.xlu0 %1456 }
 0x6a9   : > { %v1634_v4 = vmul.f32 -1.442695, %v1427_v62  ;;  %2055 = vtanh.f32 %v1427_v62 }
 0x6aa   : > { %v1633_v5 = vmul.f32 -1.442695, %v1422_v2  ;;  %2057 = vtanh.f32 %v1422_v2 }
 0x6ab   : > { %2059 = vpow2.f32 %v1634_v4 }
 0x6ac   : > { %2061 = vpow2.f32 %v1633_v5  ;;  %v1477_v19 = vpop.permute.xlu0 %1476 }
 0x6b3   : > { %v2056_v3 = vpop.eup %2055 }
 0x6b4   : > { %v2058_v6 = vpop.eup %2057  ;;  %1448 = vrot.lane.b32.xlu1 %v2056_v3, %s2079_s10 }
 0x6b5   : > { %v2060_v7 = vpop.eup %2059  ;;  %1446 = vrot.lane.b32.xlu0 %v2058_v6, %s2079_s10 }
 0x6b6   : > { %v2062_v9 = vpop.eup %2061  ;;  %v1437_v8 = vadd.f32 1.0, %v2060_v7 }
 0x6b7   : > { %v1436_v13 = vadd.f32 1.0, %v2062_v9 }
 0x6b8   : > { %2063 = vrcp.f32 %v1437_v8 }
 0x6b9   : > { %2065 = vrcp.f32 %v1436_v13 }
 0x6c2   : > { %v2064_v16 = vpop.eup %2063 }
 0x6c3   : > { %v2066_v17 = vpop.eup %2065  ;;  %v1463_v11 = vmul.f32 %v2064_v16, %v1459_v14  ;;  %v1483_v20 = vmul.f32 %v2064_v16, %v1479_v10 }
 0x6c4   : > { %v1462_v18 = vmul.f32 %v2066_v17, %v1457_v15  ;;  %v1482_v21 = vmul.f32 %v2066_v17, %v1477_v19 }
 0x6c5   : > { %1468 = vrot.lane.b32.xlu1 %v1463_v11, %s2080_s29 }
 0x6c6   : > { %1466 = vrot.lane.b32.xlu0 %v1462_v18, %s2080_s29 }
 0x6c9   : > { %1488 = vrot.lane.b32.xlu1 %v1483_v20, %s2081_s30 }
 0x6ca   : > { %1486 = vrot.lane.b32.xlu0 %v1482_v21, %s2081_s30 }
 0x726   : > { %v1449_v30 = vpop.permute.xlu1 %1448 }
 0x727   : > { %v1447_v12 = vpop.permute.xlu0 %1446  ;;  %v1453_v34 = vmul.f32 %v2064_v16, %v1449_v30 }
 0x728   : > { %v1452_v38 = vmul.f32 %v2066_v17, %v1447_v12 }
 0x737   : > { %v1469_v33 = vpop.permute.xlu1 %1468 }
 0x738   : > { %v1467_v29 = vpop.permute.xlu0 %1466  ;;  %v1473_v39 = vadd.f32 %v1469_v33, %v1453_v34 }
 0x739   : > { %v1472_v22 = vadd.f32 %v1467_v29, %v1452_v38 }
 0x73b   : > { %v1489_v49 = vpop.permute.xlu1 %1488 }
 0x73c   : > { %v1493_v44 = vadd.f32 %v1489_v49, %v1473_v39  ;;  %v1487_v58 = vpop.permute.xlu0 %1486 }
 0x73d   : > { %v1492_v41 = vadd.f32 %v1487_v58, %v1472_v22 }
 0x73e   : > { %2067 = vtanh.f32 %v1493_v44 }
 0x73f   : > { %2069 = vtanh.f32 %v1492_v41 }
 0x748   : > { %v2068_v24 = vpop.eup %2067 }
 0x749   : > { %v2070_v54 = vpop.eup %2069  ;;  %1500 = vrot.lane.b32.xlu1 %v2068_v24, %s2079_s10 }
 0x74a   : > { %1498 = vrot.lane.b32.xlu0 %v2070_v54, %s2079_s10 }
 0x7bb   : > { %v1501_v23 = vpop.permute.xlu1 %1500 }
 0x7bc   : > { %v1499_v27 = vpop.permute.xlu0 %1498  ;;  %v1505_v26 = vsel %vm255_vm0, %v1493_v44, %v1501_v23 }
 0x7bd   : > { %v1504_v61 = vsel %vm255_vm0, %v1492_v41, %v1499_v27  ;;  %1507 = vst.msk [vmem:[%s226_s13 + $0x8] sm:$0xff] %vm696_vm1, %v1505_v26 }
 0x7be   : > { %1506 = vst.msk [vmem:[%s226_s13] sm:$0xff] %vm696_vm1, %v1504_v61 }
 0x7bf PF: > { %s15_s18 = sadd.s32 1, %s2077_s18  }
 0x7c0   : > { %p12_p5 = scmp.ge.s32.totalorder %s15_s18, 6  }
 0x7c2   :  { %14 = sbr.rel (!%p12_p5) target bundleno = 1 (0x1), region = 70 }

</bundles_post_ra>
